<compile_context>
chip_gen: v5e
topology: v5e:2x2
jax: 0.10.0
libtpu: 0.0.40
codegen_flags: <defaults>
</compile_context>

<pallas_src>
import jax
import jax.numpy as jnp
from jax.experimental import pallas as pl
from jax.experimental.pallas import tpu as pltpu


def _logreg_kernel(x_ref, w_ref, b_ref, o_ref):
    # (tm, D)bf16 @ (D, O)bf16 -> (tm, O)f32 on the MXU, f32 accumulation.
    z = jnp.dot(x_ref[...], w_ref[...], preferred_element_type=jnp.float32)
    z = z + b_ref[...]                       # (tm, O) + (1, O) lane-wise broadcast
    o_ref[...] = jax.nn.sigmoid(z).astype(o_ref.dtype)


def _round_up8(x):
    return ((x + 7) // 8) * 8


def _vmem_capacity_bytes():
    try:
        return int(pltpu.get_tpu_info().vmem_capacity_bytes)
    except Exception:
        return 64 * 1024 * 1024   # v7x physical VMEM; safe lower bound everywhere


def _pick_row_tile(N, D, O, x_itemsize, out_itemsize, vmem_capacity):
    """VMEM-budget-driven row tile, lane-padding aware."""
    lane, sub = 128, 8
    d_pad = max(D, lane)
    o_pad = max(O, lane)

    budget = vmem_capacity // 2                       # ~50% of physical VMEM
    # Resident (constant index_map => single-buffered) weight + bias blocks.
    w_bytes = _round_up8(D) * o_pad * x_itemsize
    b_bytes = sub * o_pad * 4
    budget = max(budget - (w_bytes + b_bytes), 256 * 1024)

    # Double-buffered x tile + out tile per row (lane-padded).
    per_row = 2 * (d_pad * x_itemsize + o_pad * out_itemsize)
    tm_max = max(sub, (budget // per_row) // sub * sub)

    if N <= tm_max:
        if N >= 16:
            # Give both v7x TensorCores a tile (harmless on single-TC v5e/v6e).
            tm = min(_round_up8(pl.cdiv(N, 2)), tm_max)
        else:
            tm = N                                    # full-extent block is always legal
    else:
        tm = tm_max
    return tm


def logistic_regression(x, weight, bias):
    """x: (N, D) f32; weight: (O, D) f32 (native PyTorch layout); bias: (O,) f32."""
    N, D = x.shape
    O, D_w = weight.shape
    assert D == D_w, "weight inner dim must match x feature dim"

    # One-time layout/dtype prep in the wrapper: (D, O) bf16 weight, bf16 x operand.
    # Matmul accumulates in f32; bias add + sigmoid stay f32 (v5e-safe).
    mm_dtype = jnp.bfloat16
    x_mm = x.astype(mm_dtype)
    w_t = weight.T.astype(mm_dtype)          # (D, O)
    b = bias.astype(jnp.float32).reshape(1, O)

    x_itemsize = jnp.dtype(mm_dtype).itemsize
    out_itemsize = 4
    vmem_capacity = _vmem_capacity_bytes()

    tm = _pick_row_tile(N, D, O, x_itemsize, out_itemsize, vmem_capacity)
    grid_m = pl.cdiv(N, tm)

    # Actual (lane-padded) VMEM usage -> explicit limit with headroom, capped at 75%
    # of physical capacity (never the full 64 MiB on v7x).
    lane, sub = 128, 8
    used = (2 * tm * (max(D, lane) * x_itemsize + max(O, lane) * out_itemsize)
            + _round_up8(D) * max(O, lane) * x_itemsize
            + sub * max(O, lane) * 4)
    vmem_limit = int(min(max(2 * used, 16 * 1024 * 1024),
                         (3 * vmem_capacity) // 4))

    cost = pl.CostEstimate(
        flops=2 * N * D * O,
        transcendentals=N * O,
        bytes_accessed=N * D * x_itemsize + O * D * x_itemsize + O * 4 + N * O * 4,
    )

    return pl.pallas_call(
        _logreg_kernel,
        out_shape=jax.ShapeDtypeStruct((N, O), jnp.float32),
        grid_spec=pl.GridSpec(
            grid=(grid_m,),
            in_specs=[
                pl.BlockSpec((tm, D), lambda i: (i, 0)),   # streamed row tile of x
                pl.BlockSpec((D, O), lambda i: (0, 0)),    # resident (D, O) weight
                pl.BlockSpec((1, O), lambda i: (0, 0)),    # resident bias
            ],
            out_specs=pl.BlockSpec((tm, O), lambda i: (i, 0)),
        ),
        compiler_params=pltpu.CompilerParams(
            dimension_semantics=("parallel",),   # row tiles shard across TCs on v7x
            vmem_limit_bytes=vmem_limit,
        ),
        cost_estimate=cost,
    )(x_mm, w_t, b)


if __name__ == "__main__":
    key = jax.random.PRNGKey(0)
    kx, kw, kb = jax.random.split(key, 3)

    # Module config: LogisticRegression(input_dim=32, output_dim=4), batch=8.
    N, D, O = 8, 32, 4

    x = jax.random.normal(kx, (N, D), dtype=jnp.float32)
    # Deterministic init mimicking nn.Linear's uniform(-1/sqrt(D), 1/sqrt(D)).
    bound = 1.0 / jnp.sqrt(jnp.float32(D))
    weight = jax.random.uniform(kw, (O, D), dtype=jnp.float32,
                                minval=-bound, maxval=bound)
    bias = jax.random.uniform(kb, (O,), dtype=jnp.float32,
                              minval=-bound, maxval=bound)

    y = logistic_regression(x, weight, bias)
    jax.block_until_ready(y)
    assert y.shape == (N, O)

    # Matched-precision reference (bf16 operands, f32 accumulation + sigmoid).
    z_ref = jnp.dot(x.astype(jnp.bfloat16), weight.T.astype(jnp.bfloat16),
                    preferred_element_type=jnp.float32) + bias
    y_ref_bf16 = jax.nn.sigmoid(z_ref)
    assert jnp.allclose(y, y_ref_bf16, atol=1e-5), "mismatch vs bf16-matched reference"

    # Loose check against the full-f32 PyTorch semantics.
    y_ref_f32 = jax.nn.sigmoid(x @ weight.T + bias)
    assert jnp.allclose(y, y_ref_f32, atol=2e-2), "mismatch vs f32 reference"

    print("KERNEL_OK")
</pallas_src>

<mosaic_0001>
module attributes {stable_mosaic.version = 11 : i64} {
  func.func @_logreg_kernel(%arg0: i32, %arg1: memref<8x32xbf16, #tpu.memory_space<vmem>>, %arg2: memref<32x4xbf16, #tpu.memory_space<vmem>>, %arg3: memref<1x4xf32, #tpu.memory_space<vmem>>, %arg4: memref<8x4xf32, #tpu.memory_space<vmem>>) attributes {dimension_semantics = [#tpu.dimension_semantics<parallel>], iteration_bounds = array<i64: 1>, scalar_prefetch = 0 : i64, scratch_operands = 0 : i64, tpu.core_type = #tpu.core_type<tc>, window_params = [{transform_indices = @transform_0, window_bounds = array<i64: 8, 32>}, {pipeline_mode = #tpu.pipeline_mode<synchronous>, transform_indices = @transform_1, window_bounds = array<i64: 32, 4>}, {pipeline_mode = #tpu.pipeline_mode<synchronous>, transform_indices = @transform_2, window_bounds = array<i64: 1, 4>}, {transform_indices = @transform_3, window_bounds = array<i64: 8, 4>}]} {
    %c0 = arith.constant 0 : index
    %c0_0 = arith.constant 0 : index
    %0 = vector.load %arg1[%c0, %c0_0] : memref<8x32xbf16, #tpu.memory_space<vmem>>, vector<8x32xbf16>
    %c0_1 = arith.constant 0 : index
    %c0_2 = arith.constant 0 : index
    %1 = vector.load %arg2[%c0_1, %c0_2] : memref<32x4xbf16, #tpu.memory_space<vmem>>, vector<32x4xbf16>
    %cst = arith.constant dense<0.000000e+00> : vector<8x4xf32>
    %2 = tpu.matmul %0, %1, %cst {dimension_numbers = #tpu.dot_dimension_numbers<[1], [0], [0], [1], [0, 0, 1, 1], [], []>} : vector<8x32xbf16>, vector<32x4xbf16>, vector<8x4xf32> -> vector<8x4xf32>
    %c0_3 = arith.constant 0 : index
    %c0_4 = arith.constant 0 : index
    %3 = vector.load %arg3[%c0_3, %c0_4] : memref<1x4xf32, #tpu.memory_space<vmem>>, vector<1x4xf32>
    %4 = vector.broadcast %3 : vector<1x4xf32> to vector<8x4xf32>
    %5 = arith.addf %2, %4 : vector<8x4xf32>
    %6 = arith.negf %5 : vector<8x4xf32>
    %7 = math.exp %6 : vector<8x4xf32>
    %cst_5 = arith.constant 1.000000e+00 : f32
    %8 = vector.broadcast %cst_5 : f32 to vector<8x4xf32>
    %9 = arith.addf %8, %7 : vector<8x4xf32>
    %10 = arith.divf %8, %9 : vector<8x4xf32>
    %c0_6 = arith.constant 0 : index
    %c0_7 = arith.constant 0 : index
    %11 = vector.load %arg4[%c0_6, %c0_7] : memref<8x4xf32, #tpu.memory_space<vmem>>, vector<8x4xf32>
    tpu.vector_store %arg4[%c0_6, %c0_7], %10 {strides = array<i32>} : memref<8x4xf32, #tpu.memory_space<vmem>>, vector<8x4xf32>,
    return
  }
  func.func @transform_0(%arg0: i32) -> (i32, i32) {
    %c0_i32 = arith.constant 0 : i32
    %c0_i32_0 = arith.constant 0 : i32
    return %arg0, %c0_i32 : i32, i32
  }
  func.func @transform_1(%arg0: i32) -> (i32, i32) {
    %c0_i32 = arith.constant 0 : i32
    %c0_i32_0 = arith.constant 0 : i32
    %c0_i32_1 = arith.constant 0 : i32
    return %c0_i32, %c0_i32_0 : i32, i32
  }
  func.func @transform_2(%arg0: i32) -> (i32, i32) {
    %c0_i32 = arith.constant 0 : i32
    %c0_i32_0 = arith.constant 0 : i32
    %c0_i32_1 = arith.constant 0 : i32
    return %c0_i32, %c0_i32_0 : i32, i32
  }
  func.func @transform_3(%arg0: i32) -> (i32, i32) {
    %c0_i32 = arith.constant 0 : i32
    %c0_i32_0 = arith.constant 0 : i32
    return %arg0, %c0_i32 : i32, i32
  }
}

</mosaic_0001>

<bundles_post_ra>
// kernel: tpu_custom_call.1
= control target key start
LH: loop header
LB: loop body
LE: loop exit
PB: predicated region body
PF: predicated region fallthrough
CT: control target
= control target key end

     0   :  { %vm36_vm0 = vcmask 261120   ;;  %vm72_vm4 = vcmask 31744   ;;  %s130_s1 = inlined_call_operand.vmem [shape: bf16[32,4], index: 1, kind: input, shape index: {}]   ;;  %s131_s2 = inlined_call_operand.vmem [shape: f32[1,4], index: 2, kind: input, shape index: {}]   ;;  %s132_s0 = inlined_call_operand.vmem [shape: bf16[8,32], index: 0, kind: input, shape index: {}]   ;;  %s133_s3 = inlined_call_operand.vmem [shape: f32[8,4], index: 3, kind: output, shape index: {}]  }
   0x1   :  { %v89_v0 = vld [vmem:[%s130_s1 + $0x8] sm:$0xff]  ;;  %v88_v1 = vld [vmem:[%s130_s1] sm:$0xff] }
   0x2   :  { %46 = vmatpush.bf16.msra.mxu0 %v89_v0  ;;  %v15_v2 = vld [vmem:[%s132_s0] sm:$0xf] }
   0x3   :  { %v90_v3 = vld [vmem:[%s131_s2] ss:$0 sm:$0xff] }
   0x6   :  { %47 = vmatpush.bf16.msra.mxu0 %v88_v1 }
   0x9   :  { %86 = vmatmul.msk.bf16.vlgmr.msra.gmra.mxu0 %vm36_vm0, %v15_v2 }
  0x86   :  { %v49_v4 = vpop.f32.mrf.mxu0 }
  0x87   :  { %v50_v5 = vadd.f32 %v90_v3, %v49_v4 }
  0x89   :  { %v87_v6 = vmul.f32 -1.442695, %v50_v5 }
  0x8b   :  { %91 = vpow2.f32 %v87_v6 }
  0x8e   :  { %v51_v7 = vpop.f32.mrf.mxu0 }
  0x91   :  { %v92_v8 = vpop.eup %91 }
  0x92   :  { %v56_v9 = vadd.f32 1.0, %v92_v8 }
  0x94   :  { %93 = vrcp.f32 %v56_v9  ;;  %v68_v13 = vand.u32 2147483648, %v56_v9  ;;  %v66_v15 = vand.u32 2147483647, %v56_v9  ;;  %vm62_vm2 = vweird.f32 %v56_v9 }
  0x96   :  { %v69_v17 = vor.u32 1.1754944e-38, %v68_v13  ;;  %vm67_vm5 = vcmp.eq.f32.partialorder %v66_v15, 8.507059e+37 }
  0x9a   :  { %v94_v10 = vpop.eup %93 }
  0x9b   :  { %v58_v11 = vmul.f32 %v94_v10, %v56_v9  ;;  %vm63_vm1 = vweird.f32 %v94_v10 }
  0x9c   :  { %vm64_vm3 = vmor %vm62_vm2, %vm63_vm1 }
  0x9d   :  { %v59_v12 = vsub.f32 1.0, %v58_v11 }
  0x9f   :  { %v60_v14 = vmul.f32 %v94_v10, %v59_v12 }
  0xa1   :  { %v61_v16 = vadd.f32 %v94_v10, %v60_v14 }
  0xa3   :  { %v65_v18 = vsel %vm64_vm3, %v94_v10, %v61_v16 }
  0xa4   :  { %v70_v19 = vsel %vm67_vm5, %v69_v17, %v65_v18 }
  0xa5   :  { %73 = vst.msk [vmem:[%s133_s3] sm:$0xff] %vm72_vm4, %v70_v19 }

</bundles_post_ra>
